<compile_context>
chip_gen: v5e
topology: v5e:2x2
jax: 0.10.0
libtpu: 0.0.40
codegen_flags: <defaults>
</compile_context>

<pallas_src>
import jax
import jax.numpy as jnp
import numpy as np
from jax.experimental import pallas as pl
from jax.experimental.pallas import tpu as pltpu


def _round_up(x: int, m: int) -> int:
    return ((x + m - 1) // m) * m


def sine_fast_forward(waveforms, a_param, b_param, kernel_size, *, lout_tile=512):
    """Pallas implementation of Sine_fast.forward.

    waveforms : (N, 1, L) float32
    a_param   : (C, 1)    float32   (nn.Parameter a_)
    b_param   : (C, 1)    float32   (nn.Parameter b_)
    returns   : (N, C, L + 2 - Kf + 1) float32, Kf = rebuilt (even) kernel size
    """
    # --- replicate the PyTorch __init__ kernel-size massaging (static glue) ---
    K = kernel_size - 1
    if kernel_size % 2 == 0:
        K = K + 1
    half = int(K / 2)
    Kf = 2 * half                      # actual filter width after cat([left, right])
    assert Kf >= 2, "kernel_size too small"

    N, Cin, L = waveforms.shape
    assert Cin == 1, "Sine_fast only supports one input channel"
    C = a_param.shape[0]

    Lout = L + 2 - Kf + 1              # F.conv1d(..., stride=1, padding=1)
    assert Lout >= 1, "input too short for this kernel size"

    # ---------------------------------------------------------------------
    # Filter bank: batch/grid-invariant -> computed ONCE here (hoisted out of
    # the per-batch grid loop), exactly as in the PyTorch forward.
    # ---------------------------------------------------------------------
    t_right = jnp.linspace(0.0, K / 2 - 1, half, dtype=jnp.float32)
    t_left = jnp.linspace(-(K / 2) + 1, -1.0, half, dtype=jnp.float32)
    time = jnp.concatenate([t_left, t_right]).reshape(1, Kf)                 # (1, Kf)
    filt = jnp.sin(time - b_param / (a_param + 1e-8)).astype(jnp.float32)    # (C, Kf)

    # Pad channels to a full sublane group; zero filter rows -> zero outputs,
    # sliced away at the end (sublane-full stores in the kernel).
    C_pad = _round_up(max(C, 8), 8)
    filt_p = jnp.zeros((C_pad, Kf), jnp.float32).at[:C, :].set(filt)

    # ---------------------------------------------------------------------
    # Output-length tiling: lane-dense blocks (TL multiple of 128 lanes).
    # ---------------------------------------------------------------------
    TL = min(_round_up(lout_tile, 128), _round_up(Lout, 128))
    num_lt = (Lout + TL - 1) // TL
    Lout_pad = num_lt * TL

    # Per-tile input window: TL output lanes need TL + Kf - 1 samples;
    # round the halo up to a full lane group so all slices stay aligned.
    halo = _round_up(Kf - 1, 128)
    WIN = TL + halo
    Lin = Lout_pad + halo

    # Single wrapper layout pass: conv halo (1 leading zero, as in padding=1)
    # + right zero-slack, then per-tile overlapping windows so the kernel only
    # needs static, in-register slices (no dynamic lane slicing).
    x2d = waveforms.reshape(N, L).astype(jnp.float32)
    x_in = jnp.pad(x2d, ((0, 0), (1, Lin - L - 1)))                          # (N, Lin)
    if num_lt == 1:
        x_blocks = x_in[:, None, :]                                          # (N, 1, WIN)
    else:
        x_blocks = jnp.stack(
            [x_in[:, s:s + WIN] for s in range(0, num_lt * TL, TL)], axis=1)  # (N, num_lt, WIN)

    # Static choice of conv engine: tiny filter banks stay on the VPU,
    # SincNet-scale ones get im2col + one MXU matmul per tile.
    use_mxu = (C_pad * Kf) >= 4096

    def kernel(filt_ref, x_ref, o_ref):
        win = x_ref[...].reshape(1, WIN)            # per-tile input window
        f = filt_ref[...]                           # (C_pad, Kf), resident

        if use_mxu:
            # im2col + single MXU matmul per tile: (C_pad, Kf) @ (Kf, TL)
            patches = jnp.concatenate([win[:, k:k + TL] for k in range(Kf)], axis=0)
            out = jnp.dot(f, patches, preferred_element_type=jnp.float32)
        else:
            # Kf broadcast multiply-accumulates on the VPU (no im2col, no MXU).
            out = jnp.zeros((C_pad, TL), jnp.float32)
            for k in range(Kf):
                out = out + f[:, k:k + 1] * win[:, k:k + TL]

        o_ref[...] = out.reshape(1, C_pad, TL).astype(o_ref.dtype)

    # Explicit scoped-VMEM budget: double-buffered blocks + in-kernel
    # temporaries, with headroom, capped below v7x's 64 MiB physical VMEM.
    blk_in = 4 * (C_pad * Kf + WIN)
    blk_out = 4 * C_pad * TL
    tmp = 4 * (((Kf * TL) if use_mxu else 0) + C_pad * TL + WIN)
    vmem_limit = int(min(max(4 * (blk_in + blk_out) + 2 * tmp, 8 << 20), 60 << 20))

    out_full = pl.pallas_call(
        kernel,
        out_shape=jax.ShapeDtypeStruct((N, C_pad, Lout_pad), jnp.float32),
        grid=(N, num_lt),
        in_specs=[
            pl.BlockSpec((C_pad, Kf), lambda n, lt: (0, 0)),       # filter bank (resident)
            pl.BlockSpec((1, 1, WIN), lambda n, lt: (n, lt, 0)),   # per-tile input window
        ],
        out_specs=pl.BlockSpec((1, C_pad, TL), lambda n, lt: (n, 0, lt)),
        compiler_params=pltpu.CompilerParams(
            dimension_semantics=("parallel", "parallel"),
            vmem_limit_bytes=vmem_limit,
        ),
    )(filt_p, x_blocks)

    # Strip the alignment padding (layout plumbing only).
    return out_full[:, :C, :Lout]


def sine_fast_reference(waveforms, a_param, b_param, kernel_size):
    """Pure-JAX reference (mirrors the PyTorch code) for correctness checking."""
    K = kernel_size - 1
    if kernel_size % 2 == 0:
        K = K + 1
    half = int(K / 2)
    t_right = jnp.linspace(0.0, K / 2 - 1, half, dtype=jnp.float32)
    t_left = jnp.linspace(-(K / 2) + 1, -1.0, half, dtype=jnp.float32)
    p_right = t_right[None, :] - b_param / (a_param + 1e-8)
    p_left = t_left[None, :] - b_param / (a_param + 1e-8)
    filt = jnp.concatenate([jnp.sin(p_left), jnp.sin(p_right)], axis=1)  # (C, Kf)
    w = filt.reshape(a_param.shape[0], 1, 2 * half)
    return jax.lax.conv_general_dilated(
        waveforms, w, window_strides=(1,), padding=[(1, 1)],
        dimension_numbers=("NCH", "OIH", "NCH"))


if __name__ == "__main__":
    key = jax.random.PRNGKey(0)

    # small shapes consistent with the module: batch=2, in_channels=1, length=16
    N, L = 2, 16
    out_channels, kernel_size = 4, 8

    waveforms = jax.random.normal(key, (N, 1, L), dtype=jnp.float32)

    # deterministic parameter init, exactly as in __init__
    a_param = jnp.linspace(1.0, 10.0, out_channels, dtype=jnp.float32).reshape(-1, 1)
    b_param = jnp.linspace(0.0, 10.0, out_channels, dtype=jnp.float32).reshape(-1, 1)

    out = sine_fast_forward(waveforms, a_param, b_param, kernel_size)
    out = jax.block_until_ready(out)

    ref = sine_fast_reference(waveforms, a_param, b_param, kernel_size)
    np.testing.assert_allclose(np.asarray(out), np.asarray(ref), rtol=1e-5, atol=1e-5)

    print("KERNEL_OK")
</pallas_src>

<mosaic_0001>
module attributes {stable_mosaic.version = 11 : i64} {
  func.func @kernel(%arg0: i32, %arg1: i32, %arg2: memref<8x8xf32, #tpu.memory_space<vmem>>, %arg3: memref<1x1x256xf32, #tpu.memory_space<vmem>>, %arg4: memref<1x8x128xf32, #tpu.memory_space<vmem>>) attributes {dimension_semantics = [#tpu.dimension_semantics<parallel>, #tpu.dimension_semantics<parallel>], iteration_bounds = array<i64: 2, 1>, scalar_prefetch = 0 : i64, scratch_operands = 0 : i64, tpu.core_type = #tpu.core_type<tc>, window_params = [{pipeline_mode = #tpu.pipeline_mode<synchronous>, transform_indices = @transform_0, window_bounds = array<i64: 8, 8>}, {transform_indices = @transform_1, window_bounds = array<i64: 1, 1, 256>}, {transform_indices = @transform_2, window_bounds = array<i64: 1, 8, 128>}]} {
    %c0 = arith.constant 0 : index
    %c0_0 = arith.constant 0 : index
    %c0_1 = arith.constant 0 : index
    %0 = vector.load %arg3[%c0, %c0_0, %c0_1] : memref<1x1x256xf32, #tpu.memory_space<vmem>>, vector<1x1x256xf32>
    %1 = vector.shape_cast %0 : vector<1x1x256xf32> to vector<1x256xf32>
    %c0_2 = arith.constant 0 : index
    %c0_3 = arith.constant 0 : index
    %2 = vector.load %arg2[%c0_2, %c0_3] : memref<8x8xf32, #tpu.memory_space<vmem>>, vector<8x8xf32>
    %cst = arith.constant 0.000000e+00 : f32
    %3 = vector.broadcast %cst : f32 to vector<8x128xf32>
    %4 = vector.extract_strided_slice %2 {offsets = [0, 0], sizes = [8, 1], strides = [1, 1]} : vector<8x8xf32> to vector<8x1xf32>
    %5 = vector.extract_strided_slice %1 {offsets = [0, 0], sizes = [1, 128], strides = [1, 1]} : vector<1x256xf32> to vector<1x128xf32>
    %6 = vector.broadcast %4 : vector<8x1xf32> to vector<8x128xf32>
    %7 = vector.broadcast %5 : vector<1x128xf32> to vector<8x128xf32>
    %8 = arith.mulf %6, %7 : vector<8x128xf32>
    %9 = arith.addf %3, %8 : vector<8x128xf32>
    %10 = vector.extract_strided_slice %2 {offsets = [0, 1], sizes = [8, 1], strides = [1, 1]} : vector<8x8xf32> to vector<8x1xf32>
    %11 = vector.extract_strided_slice %1 {offsets = [0, 1], sizes = [1, 128], strides = [1, 1]} : vector<1x256xf32> to vector<1x128xf32>
    %12 = vector.broadcast %10 : vector<8x1xf32> to vector<8x128xf32>
    %13 = vector.broadcast %11 : vector<1x128xf32> to vector<8x128xf32>
    %14 = arith.mulf %12, %13 : vector<8x128xf32>
    %15 = arith.addf %9, %14 : vector<8x128xf32>
    %16 = vector.extract_strided_slice %2 {offsets = [0, 2], sizes = [8, 1], strides = [1, 1]} : vector<8x8xf32> to vector<8x1xf32>
    %17 = vector.extract_strided_slice %1 {offsets = [0, 2], sizes = [1, 128], strides = [1, 1]} : vector<1x256xf32> to vector<1x128xf32>
    %18 = vector.broadcast %16 : vector<8x1xf32> to vector<8x128xf32>
    %19 = vector.broadcast %17 : vector<1x128xf32> to vector<8x128xf32>
    %20 = arith.mulf %18, %19 : vector<8x128xf32>
    %21 = arith.addf %15, %20 : vector<8x128xf32>
    %22 = vector.extract_strided_slice %2 {offsets = [0, 3], sizes = [8, 1], strides = [1, 1]} : vector<8x8xf32> to vector<8x1xf32>
    %23 = vector.extract_strided_slice %1 {offsets = [0, 3], sizes = [1, 128], strides = [1, 1]} : vector<1x256xf32> to vector<1x128xf32>
    %24 = vector.broadcast %22 : vector<8x1xf32> to vector<8x128xf32>
    %25 = vector.broadcast %23 : vector<1x128xf32> to vector<8x128xf32>
    %26 = arith.mulf %24, %25 : vector<8x128xf32>
    %27 = arith.addf %21, %26 : vector<8x128xf32>
    %28 = vector.extract_strided_slice %2 {offsets = [0, 4], sizes = [8, 1], strides = [1, 1]} : vector<8x8xf32> to vector<8x1xf32>
    %29 = vector.extract_strided_slice %1 {offsets = [0, 4], sizes = [1, 128], strides = [1, 1]} : vector<1x256xf32> to vector<1x128xf32>
    %30 = vector.broadcast %28 : vector<8x1xf32> to vector<8x128xf32>
    %31 = vector.broadcast %29 : vector<1x128xf32> to vector<8x128xf32>
    %32 = arith.mulf %30, %31 : vector<8x128xf32>
    %33 = arith.addf %27, %32 : vector<8x128xf32>
    %34 = vector.extract_strided_slice %2 {offsets = [0, 5], sizes = [8, 1], strides = [1, 1]} : vector<8x8xf32> to vector<8x1xf32>
    %35 = vector.extract_strided_slice %1 {offsets = [0, 5], sizes = [1, 128], strides = [1, 1]} : vector<1x256xf32> to vector<1x128xf32>
    %36 = vector.broadcast %34 : vector<8x1xf32> to vector<8x128xf32>
    %37 = vector.broadcast %35 : vector<1x128xf32> to vector<8x128xf32>
    %38 = arith.mulf %36, %37 : vector<8x128xf32>
    %39 = arith.addf %33, %38 : vector<8x128xf32>
    %40 = vector.extract_strided_slice %2 {offsets = [0, 6], sizes = [8, 1], strides = [1, 1]} : vector<8x8xf32> to vector<8x1xf32>
    %41 = vector.extract_strided_slice %1 {offsets = [0, 6], sizes = [1, 128], strides = [1, 1]} : vector<1x256xf32> to vector<1x128xf32>
    %42 = vector.broadcast %40 : vector<8x1xf32> to vector<8x128xf32>
    %43 = vector.broadcast %41 : vector<1x128xf32> to vector<8x128xf32>
    %44 = arith.mulf %42, %43 : vector<8x128xf32>
    %45 = arith.addf %39, %44 : vector<8x128xf32>
    %46 = vector.extract_strided_slice %2 {offsets = [0, 7], sizes = [8, 1], strides = [1, 1]} : vector<8x8xf32> to vector<8x1xf32>
    %47 = vector.extract_strided_slice %1 {offsets = [0, 7], sizes = [1, 128], strides = [1, 1]} : vector<1x256xf32> to vector<1x128xf32>
    %48 = vector.broadcast %46 : vector<8x1xf32> to vector<8x128xf32>
    %49 = vector.broadcast %47 : vector<1x128xf32> to vector<8x128xf32>
    %50 = arith.mulf %48, %49 : vector<8x128xf32>
    %51 = arith.addf %45, %50 : vector<8x128xf32>
    %52 = vector.shape_cast %51 : vector<8x128xf32> to vector<1x8x128xf32>
    %c0_4 = arith.constant 0 : index
    %c0_5 = arith.constant 0 : index
    %c0_6 = arith.constant 0 : index
    %53 = vector.load %arg4[%c0_4, %c0_5, %c0_6] : memref<1x8x128xf32, #tpu.memory_space<vmem>>, vector<1x8x128xf32>
    tpu.vector_store %arg4[%c0_4, %c0_5, %c0_6], %52 {strides = array<i32>} : memref<1x8x128xf32, #tpu.memory_space<vmem>>, vector<1x8x128xf32>,
    return
  }
  func.func @transform_0(%arg0: i32, %arg1: i32) -> (i32, i32) {
    %c0_i32 = arith.constant 0 : i32
    %c0_i32_0 = arith.constant 0 : i32
    %c0_i32_1 = arith.constant 0 : i32
    return %c0_i32, %c0_i32_0 : i32, i32
  }
  func.func @transform_1(%arg0: i32, %arg1: i32) -> (i32, i32, i32) {
    %c0_i32 = arith.constant 0 : i32
    %c0_i32_0 = arith.constant 0 : i32
    return %arg0, %arg1, %c0_i32 : i32, i32, i32
  }
  func.func @transform_2(%arg0: i32, %arg1: i32) -> (i32, i32, i32) {
    %c0_i32 = arith.constant 0 : i32
    %c0_i32_0 = arith.constant 0 : i32
    return %arg0, %c0_i32, %arg1 : i32, i32, i32
  }
}

</mosaic_0001>

<bundles_post_ra>
// kernel: tpu_custom_call.1
= control target key start
LH: loop header
LB: loop body
LE: loop exit
PB: predicated region body
PF: predicated region fallthrough
CT: control target
= control target key end

     0   :  { %7 = vsyncpa [#allocation3], 0  ;;  %s872_s0 = inlined_call_operand.hbm [shape: f32[8,8], index: 0, kind: input, shape index: {}]   ;;  %s873_s1 = inlined_call_operand.hbm [shape: f32[2,1,256], index: 1, kind: input, shape index: {}]   ;;  %s874_s2 = inlined_call_operand.hbm [shape: f32[2,8,128], index: 2, kind: output, shape index: {}]  }
   0x1   :  { %8 = vsyncpa [#allocation6], 0 }
   0x2   :  { %10 = vsyncpa [#allocation6 + $0x1], 0 }
   0x3   :  { %11 = vsyncpa [#allocation4], 0 }
   0x4   :  { %13 = vsyncpa [#allocation4 + $0x1], 0  ;;  %s722_s9 = smov 0   ;;  %s724_s10 = smov 0  }
   0x5   :  { %s726_s11 = smov 0   ;;  %s728_s12 = smov 0  }
   0x6   :  { %s730_s13 = smov 0   ;;  %s732_s14 = smov 0  }
   0x7 LB: > { %s431_s15 = sadd.s32 4294967295, %s689_s14   ;;  %s432_s16 = sadd.s32 4294967294, %s689_s14   ;;  %s689_s14 = sphi %s732_s14, %s19_s14   ;;  %s685_s13 = sphi %s730_s13, %s886_s13   ;;  %s681_s12 = sphi %s728_s12, %s885_s12   ;;  %s677_s11 = sphi %s726_s11, %s884_s11   ;;  %s673_s10 = sphi %s724_s10, %s883_s10   ;;  %s669_s9 = sphi %s722_s9, %s882_s9  }
   0x8   : > { %p74_p0 = scmp.ne.s32.totalorder %s673_s10, %s669_s9  ;;  %p756_p1 = scmp.eq.s32.totalorder %s431_s15, 0 }
   0x9   : > { %p760_p2 = scmp.eq.s32.totalorder %s431_s15, 1  ;;  %p106_p3 = scmp.eq.s32.totalorder %s432_s16, 1 }
   0xa   : > { %p766_p4 = por %p756_p1, %p74_p0  ;;  %p433_p5 = scmp.ge.s32.totalorder %s689_s14, 1 }
   0xb   : > { %p771_p6 = por %p106_p3, %p74_p0  ;;  %p113_p7 = scmp.lt.s32.totalorder %s689_s14, 3 }
   0xc   : > { %s125_s23 = sshll.u32 %s872_s0, 4  ;;  %p435_p9 = scmp.ge.s32.totalorder %s689_s14, 2  ;;  %s126_s23 = int_to_ptr.hbm [resolvable:$true] %s125_s23 }
   0xd   : > { %p779_p8 = pnand %p433_p5, %p113_p7  ;;  %s691_s25 = smov [#allocation2]  }
   0xe   : > { %s127_s26 = sshll.u32 %s691_s25, 4  ;;  %s31_s27 = sadd.s32 1, %s685_s13  ;;  %s128_s26 = int_to_ptr.vmem [resolvable:$true] %s127_s26 }
   0xf   : > { %p454_p10 = pneg %p779_p8  ;;  %p33_p12 = scmp.ge.s32.totalorder %s31_s27, 2 }
  0x10   : > { %s61_s28 = sadd.s32 1, %s677_s11  ;;  %p68_p13 = scmp.ne.s32.totalorder %s677_s11, %s673_s10 }
  0x11   : > { %p455_p11 = pnand %p454_p10, %p756_p1  ;;  %p69_p0 = scmp.eq.s32.totalorder %s689_s14, 0 }
  0x12   : > { %s888_s27 = smov (%p33_p12, %s31_s27), 0  ;;  %p801_p5 = por %p760_p2, %p68_p13 }
  0x13   : > { %457 = dma.hbm_to_vmem [thread:$0]  (!%p455_p11), %s126_s23, 128, %s128_s26, [#allocation3]  }
  0x14   : > { %p795_p3 = por %p69_p0, %p68_p13  ;;  %s56_s3 = ssub.s32 %s685_s13, %s888_s27 }
  0x15   : > { %p467_p7 = scmp.lt.s32.totalorder %s689_s14, 2  ;;  %p59_p10 = scmp.eq.s32.totalorder %s56_s3, 0 }
  0x16   : > { %s138_s4 = sand.u32 1, %s677_s11   ;;  %s437_s7 = sshll.u32 %s685_s13, 1 }
  0x17   : > { %s436_s5 = sshll.u32 %s138_s4, 1  ;;  %s148_s16 = scalar_lea.hbm %s873_s1, %s437_s7 }
  0x18   : > { %s810_s6 = scalar_select %p59_p10, %s677_s11, %s61_s28  }
  0x19   : > { %s142_s21 = scalar_lea.vmem [#allocation5], %s436_s5  ;;  %s150_s18 = sshll.u32 %s148_s16, 4  ;;  %s151_s18 = int_to_ptr.hbm [resolvable:$true] %s150_s18 }
  0x1a   : > { %s152_s22 = sshll.u32 %s142_s21, 4  ;;  %p459_p2 = pnand %p467_p7, %p795_p3  ;;  %s153_s22 = int_to_ptr.vmem [resolvable:$true] %s152_s22 }
  0x1b   : > { %s139_s23 = scalar_lea.sflag [#allocation6], %s138_s4  ;;  %161 = sbr.rel (%p779_p8) target bundleno = 310 (0x136), region = 28 }
  0x1c   : > { %461 = dma.hbm_to_vmem [thread:$0]  (!%p459_p2), %s151_s18, 32, %s153_s22, %s139_s23  }
  0x20   : > { %656 = dma.done.wait (%p756_p1), [#allocation3], 128  }
  0x21   : > { %658 = vsyncadd (%p756_p1), [#allocation3], 4294967168  ;;  %s825_s25 = sand.u32 1, %s673_s10  }
  0x22   : > { %s440_s26 = sshll.u32 %s825_s25, 1  ;;  %s169_s28 = scalar_lea.sflag [#allocation6], %s825_s25 }
  0x23   : > { %s172_s29 = scalar_lea.vmem [#allocation5], %s440_s26 }
  0x24   : > { %660 = dma.done.wait (%p766_p4), %s169_s28, 32  }
  0x25   : > { %662 = vsyncadd (%p766_p4), %s169_s28, 4294967264  ;;  %v692_v0 = vmov 1   ;;  %v693_v1 = vmov 3   ;;  %v694_v2 = vmov 5   ;;  %v195_v3 = vld [vmem:[#allocation2] sm:$0xff]  ;;  %v695_v4 = vmov 2  }
  0x26   : > { %534 = vset.pattern.permute.xlu0 %v692_v0  ;;  %536 = vset.pattern.permute.xlu1 %v693_v1  ;;  %v696_v5 = vmov 4   ;;  %v697_v6 = vmov 6   ;;  %v698_v7 = vmov 7   ;;  %v699_v8 = vmov 0   ;;  %v194_v9 = vld [vmem:[%s172_s29] sm:$0x3] }
  0x27   : > { %538 = vset.pattern.permute.xlu2 %v694_v2  ;;  %207 = vperm.xlu0 %534, %v195_v3   ;;  %v202_v10 = vperm.slane %v194_v9, 0  ;;  %v210_v11 = vperm.slane %v194_v9, 1  ;;  %s700_s17 = smov 127   ;;  %s701_s19 = smov 125   ;;  %vm220_vm0 = vcmask 1039360   ;;  %vm236_vm1 = vcmask 1031168  }
  0x28   : > { %241 = vperm.xlu1 %536, %v195_v3   ;;  %273 = vperm.xlu2 %538, %v195_v3   ;;  %s702_s24 = smov 126   ;;  %s703_s3 = smov 124   ;;  %vm252_vm2 = vcmask 1022976   ;;  %vm268_vm3 = vcmask 1014784   ;;  %vm284_vm4 = vcmask 1006592   ;;  %vm300_vm5 = vcmask 998400  }
  0x29   : > { %s704_s4 = smov 122   ;;  %s705_s5 = smov 123   ;;  %vm316_vm6 = vcmask 990208  }
  0x2a   : > { %s706_s7 = smov 121   ;;  %s441_s8 = sshll.u32 %s825_s25, 3 }
  0x2b   : > { %s443_s15 = sshll.u32 %s681_s12, 3  ;;  %s193_s18 = scalar_lea.vmem [#allocation7], %s441_s8 }
  0x2c   : > { %s333_s22 = scalar_lea.hbm %s874_s2, %s443_s15  ;;  %s335_s23 = sshll.u32 %s193_s18, 4  ;;  %s336_s23 = int_to_ptr.vmem [resolvable:$true] %s335_s23 }
  0x2d   : > { %s337_s26 = sshll.u32 %s333_s22, 4  ;;  %s322_s12 = scalar_lea.sflag [#allocation4], %s825_s25  ;;  %s338_s26 = int_to_ptr.hbm [resolvable:$true] %s337_s26 }
  0x2e   : > { %s617_s28 = sshra.s32 %s338_s26, 4  ;;  %s618_s28 = int_to_ptr.hbm [resolvable:$true] %s617_s28 }
  0x2f   : > { %535 = vset.pattern.permute.xlu0 %v695_v4  ;;  %s619_s29 = scalar_lea.hbm %s618_s28, 8  ;;  %p624_p11 = scmp.lt.s32.totalorder %s618_s28, %s874_s2 }
  0x30   : > { %537 = vset.pattern.permute.xlu1 %v696_v5  ;;  %225 = vperm.xlu0 %535, %v195_v3   ;;  %p620_p1 = scmp.ne.s32.totalorder %s618_s28, %s619_s29 }
  0x31   : > { %257 = vperm.xlu1 %537, %v195_v3   ;;  %539 = vset.pattern.permute.xlu2 %v697_v6 }
  0x32   : > { %289 = vperm.xlu2 %539, %v195_v3   ;;  %p621_p4 = pnand %p620_p1, %p801_p5 }
  0x34   : > { %p622_p8 = pneg %p621_p4 }
  0x38   : > { %542 = vset.pattern.permute.xlu0 %v698_v7 }
  0x39   : > { %540 = vset.pattern.permute.xlu1 %v698_v7 }
  0x3a   : > { %305 = vperm.xlu1 %540, %v195_v3   ;;  %541 = vset.pattern.permute.xlu2 %v699_v8 }
  0x3b   : > { %198 = vperm.xlu2 %541, %v195_v3  }
  0x82   : > { %v274_v20 = vpop.permute.xlu2 %273 }
  0x83   : > { %v276_v27 = vmul.f32 %v274_v20, %v202_v10  ;;  %v277_v28 = vmul.f32 %v274_v20, %v210_v11 }
  0x8c   : > { %v290_v25 = vpop.permute.xlu2 %289 }
  0x8d   : > { %v292_v26 = vmul.f32 %v290_v25, %v202_v10  ;;  %v293_v32 = vmul.f32 %v290_v25, %v210_v11 }
  0x95   : > { %v199_v33 = vpop.permute.xlu2 %198 }
  0x96   : > { %v204_v40 = vmul.f32 %v202_v10, %v199_v33 }
  0x99   : > { %v208_v12 = vpop.permute.xlu0 %207 }
  0x9a   : > { %v212_v13 = vmul.f32 %v208_v12, %v202_v10  ;;  %v213_v14 = vmul.f32 %v210_v11, %v208_v12  ;;  %v242_v15 = vpop.permute.xlu1 %241 }
  0x9b   : > { %v244_v16 = vmul.f32 %v242_v15, %v202_v10  ;;  %v245_v24 = vmul.f32 %v242_v15, %v210_v11 }
  0x9c   : > { %218 = vrot.lane.b32.xlu1 %v213_v14, %s700_s17  ;;  %216 = vrot.lane.b32.xlu0 %v212_v13, %s700_s17 }
  0xa2   : > { %v226_v17 = vpop.permute.xlu0 %225 }
  0xa3   : > { %v228_v18 = vmul.f32 %v226_v17, %v202_v10  ;;  %v229_v19 = vmul.f32 %v226_v17, %v210_v11  ;;  %v258_v21 = vpop.permute.xlu1 %257 }
  0xa4   : > { %248 = vrot.lane.b32.xlu1 %v244_v16, %s701_s19  ;;  %v261_v22 = vmul.f32 %v258_v21, %v210_v11  ;;  %v260_v23 = vmul.f32 %v258_v21, %v202_v10 }
  0xa5   : > { %232 = vrot.lane.b32.xlu2 %v228_v18, %s702_s24  ;;  %234 = vrot.lane.b32.xlu0 %v229_v19, %s702_s24  ;;  %s623_s24 = scalar_lea.hbm %s874_s2, 16 }
  0xa6   : > { %p625_p12 = scmp.lt.s32.totalorder %s623_s24, %s619_s29 }
  0xa8   : > { %p626_p13 = por %p625_p12, %p624_p11 }
  0xaa   : > { %p627_p0 = pnand %p626_p13, %p622_p8 }
  0xac   : > { %266 = vrot.lane.b32.xlu1 %v261_v22, %s703_s3  ;;  %v306_v29 = vpop.permute.xlu1 %305 }
  0xad   : > { %250 = vrot.lane.b32.xlu2 %v245_v24, %s701_s19  ;;  %264 = vrot.lane.b32.xlu0 %v260_v23, %s703_s3  ;;  %v309_v30 = vmul.f32 %v306_v29, %v210_v11  ;;  %v308_v31 = vmul.f32 %v306_v29, %v202_v10 }
  0xb4   : > { %296 = vrot.lane.b32.xlu1 %v292_v26, %s704_s4 }
  0xb5   : > { %280 = vrot.lane.b32.xlu2 %v276_v27, %s705_s5  ;;  %282 = vrot.lane.b32.xlu0 %v277_v28, %s705_s5 }
  0xbc   : > { %314 = vrot.lane.b32.xlu1 %v309_v30, %s706_s7 }
  0xbd   : > { %298 = vrot.lane.b32.xlu2 %v293_v32, %s704_s4  ;;  %312 = vrot.lane.b32.xlu0 %v308_v31, %s706_s7 }
  0xff   : > { %v233_v36 = vpop.permute.xlu2 %232 }
 0x107   : > { %v251_v39 = vpop.permute.xlu2 %250 }
 0x10e   : > { %v219_v34 = vpop.permute.xlu1 %218  ;;  %v217_v35 = vpop.permute.xlu0 %216 }
 0x10f   : > { %v221_v41 = vsel %vm220_vm0, %v217_v35, %v219_v34  ;;  %v281_v46 = vpop.permute.xlu2 %280 }
 0x110   : > { %v223_v45 = vadd.f32 %v221_v41, %v204_v40 }
 0x116   : > { %v249_v37 = vpop.permute.xlu1 %248 }
 0x117   : > { %v235_v38 = vpop.permute.xlu0 %234  ;;  %v253_v48 = vsel %vm252_vm2, %v249_v37, %v251_v39  ;;  %v299_v56 = vpop.permute.xlu2 %298 }
 0x118   : > { %v237_v44 = vsel %vm236_vm1, %v233_v36, %v235_v38 }
 0x119   : > { %v239_v47 = vadd.f32 %v237_v44, %v223_v45 }
 0x11b   : > { %v255_v51 = vadd.f32 %v253_v48, %v239_v47 }
 0x11e   : > { %v267_v42 = vpop.permute.xlu1 %266 }
 0x11f   : > { %v265_v43 = vpop.permute.xlu0 %264 }
 0x120   : > { %v269_v49 = vsel %vm268_vm3, %v265_v43, %v267_v42 }
 0x121   : > { %v271_v54 = vadd.f32 %v269_v49, %v255_v51 }
 0x126   : > { %v297_v50 = vpop.permute.xlu1 %296 }
 0x127   : > { %v283_v52 = vpop.permute.xlu0 %282  ;;  %v301_v57 = vsel %vm300_vm5, %v297_v50, %v299_v56 }
 0x128   : > { %v285_v53 = vsel %vm284_vm4, %v281_v46, %v283_v52 }
 0x129   : > { %v287_v55 = vadd.f32 %v285_v53, %v271_v54 }
 0x12b   : > { %v303_v60 = vadd.f32 %v301_v57, %v287_v55 }
 0x12e   : > { %v315_v58 = vpop.permute.xlu1 %314 }
 0x12f   : > { %v313_v59 = vpop.permute.xlu0 %312 }
 0x130   : > { %v317_v61 = vsel %vm316_vm6, %v313_v59, %v315_v58 }
 0x131   : > { %v319_v62 = vadd.f32 %v317_v61, %v303_v60 }
 0x133   : > { %320 = vst [vmem:[%s193_s18] sm:$0xff] %v319_v62 }
 0x134   : > { %630 = shalt.err (!%p627_p0)
}
 0x135   : > { %452 = dma.vmem_to_hbm [thread:$0]  (%p801_p5), %s336_s23, 128, %s338_s26, %s322_s12  }
 0x136 PF: > { %s349_s25 = sand.u32 1, %s669_s9   ;;  %p463_p3 = pnand %p435_p9, %p771_p6 }
 0x137   : > { %s350_s5 = scalar_lea.sflag [#allocation4], %s349_s25 }
 0x138   : > { %p464_p7 = pneg %p463_p3 }
 0x13a   : > { %664 = dma.done.wait (%p464_p7), %s350_s5, 128  }
 0x13b   : > { %666 = vsyncadd (%p464_p7), %s350_s5, 4294967168  ;;  %s19_s14 = sadd.s32 1, %s689_s14   ;;  %s882_s9 = smov %s673_s10 }
 0x13c   : > { %p16_p10 = scmp.ge.s32.totalorder %s19_s14, 4   ;;  %s883_s10 = smov %s677_s11 }
 0x13d   : > { %s884_s11 = smov %s810_s6  ;;  %s885_s12 = smov %s685_s13 }
 0x13e   : > { %s886_s13 = smov %s888_s27  ;;  %18 = sbr.rel (!%p16_p10) target bundleno = 7 (0x7), region = 78 }
 0x143   :  { %356 = vsyncpa [#allocation3], 1 }
 0x144   :  { %358 = vsyncpa [#allocation3 + $0x1], 1 }
 0x145   :  { %359 = vsyncpa [#allocation6], 1 }
 0x146   :  { %361 = vsyncpa [#allocation6 + $0x1], 1 }
 0x147   :  { %362 = vsyncpa [#allocation4], 1 }
 0x148   :  { %364 = vsyncpa [#allocation4 + $0x1], 1 }

</bundles_post_ra>
